<compile_context>
chip_gen: v7x
topology: tpu7x:2x2x1
jax: 0.10.0
libtpu: 0.0.40
codegen_flags: <defaults>
</compile_context>

<pallas_src>
import math

import jax
import jax.numpy as jnp
import numpy as np
from jax.experimental import pallas as pl
from jax.experimental.pallas import tpu as pltpu

K = 3  # kernel_size
S = 3  # stride (nn.MaxPool2d defaults stride = kernel_size)


def _out_dim(n, k=K, s=S):
    """PyTorch pooling output size, ceil_mode=True, padding=0, dilation=1."""
    o = math.ceil((n - k) / s) + 1
    if (o - 1) * s >= n:  # last window must start inside the input
        o -= 1
    return o


def _pad_value(dtype):
    if jnp.issubdtype(dtype, jnp.floating):
        return -jnp.inf
    return jnp.iinfo(dtype).min


def _pick_tiles(oh, ow, nc, itemsize):
    """Pick (output-row tile, channel-lane tile)."""
    # Lane tile over channels: full extent if small, else a multiple of 128,
    # grown toward 512 lanes so per-grid-step work amortizes step overhead.
    if nc <= 128:
        t_nc = nc
    else:
        t_nc = 128
        while t_nc < 512 and t_nc * 2 <= nc:
            t_nc *= 2
    # Row tile: keep the input block around ~2 MiB of VMEM (double-buffered by
    # Pallas), safe for v7x's smaller VMEM.  Input block VMEM is roughly
    # t_oh * ow * 16 * t_nc * itemsize (the 9-long window axis pads to 16 sublanes).
    budget = 2 * 1024 * 1024
    per_row = ow * 16 * t_nc * itemsize
    t_oh = max(1, min(oh, budget // max(per_row, 1)))
    return t_oh, t_nc


def _maxpool_kernel(x_ref, o_ref):
    # x_ref: (t_oh, OW, 9, t_nc)   -- 9 = flattened 3x3 window, channels on lanes
    # o_ref: (t_oh, OW, t_nc)
    o_ref[...] = jnp.max(x_ref[...], axis=2)


@jax.jit
def maxpool2d_ceil(x):
    """MaxPool2d(kernel_size=3, stride=3, ceil_mode=True) on NCHW input."""
    N, C, H, W = x.shape
    NC = N * C
    OH, OW = _out_dim(H), _out_dim(W)
    Hp, Wp = OH * S, OW * S
    dtype = x.dtype
    itemsize = jnp.dtype(dtype).itemsize

    # ---- layout plumbing (fused by XLA): NCHW -> padded (OH, OW, 9, NC) ----
    xf = x.reshape(NC, H, W)
    xf = jnp.pad(xf, ((0, 0), (0, Hp - H), (0, Wp - W)),
                 constant_values=_pad_value(dtype))
    # (NC, OH, 3, OW, 3) -> (OH, OW, 3, 3, NC) -> (OH, OW, 9, NC)
    xf = xf.reshape(NC, OH, S, OW, S).transpose(1, 3, 2, 4, 0)
    xf = xf.reshape(OH, OW, K * K, NC)

    t_oh, t_nc = _pick_tiles(OH, OW, NC, itemsize)
    grid = (pl.cdiv(NC, t_nc), pl.cdiv(OH, t_oh))

    in_bytes = OH * OW * K * K * NC * itemsize
    out_bytes = OH * OW * NC * itemsize

    out = pl.pallas_call(
        _maxpool_kernel,
        out_shape=jax.ShapeDtypeStruct((OH, OW, NC), dtype),
        grid=grid,
        in_specs=[pl.BlockSpec((t_oh, OW, K * K, t_nc),
                               lambda c, h: (h, 0, 0, c))],
        out_specs=pl.BlockSpec((t_oh, OW, t_nc),
                               lambda c, h: (h, 0, c)),
        compiler_params=pltpu.CompilerParams(
            dimension_semantics=("parallel", "parallel"),
            vmem_limit_bytes=32 * 1024 * 1024),
        cost_estimate=pl.CostEstimate(flops=8 * OH * OW * NC,
                                      transcendentals=0,
                                      bytes_accessed=in_bytes + out_bytes),
    )(xf)

    # (OH, OW, NC) -> NCHW
    return out.transpose(2, 0, 1).reshape(N, C, OH, OW)


def _ref_maxpool(x_np):
    """Pure-numpy reference with identical ceil_mode semantics."""
    N, C, H, W = x_np.shape
    OH, OW = _out_dim(H), _out_dim(W)
    out = np.empty((N, C, OH, OW), dtype=x_np.dtype)
    for oh in range(OH):
        for ow in range(OW):
            h0, w0 = oh * S, ow * S
            h1, w1 = min(h0 + K, H), min(w0 + K, W)
            out[:, :, oh, ow] = x_np[:, :, h0:h1, w0:w1].max(axis=(2, 3))
    return out


if __name__ == "__main__":
    key = jax.random.PRNGKey(0)

    # Primary case mirrors the script: torch.reshape(x, shape=[1, 1, 5, 5]);
    # extra cases exercise border clipping, channel tiling and the lane grid.
    cases = [(1, 1, 5, 5), (2, 4, 16, 16), (1, 1024, 7, 7)]
    for shape in cases:
        key, sub = jax.random.split(key)
        x = jax.random.normal(sub, shape, dtype=jnp.float32)
        y = jax.block_until_ready(maxpool2d_ceil(x))
        ref = _ref_maxpool(np.asarray(x))
        assert y.shape == ref.shape, (shape, y.shape, ref.shape)
        np.testing.assert_allclose(np.asarray(y), ref, rtol=0, atol=0)

    print("KERNEL_OK")
</pallas_src>

<mosaic_0001>
module attributes {stable_mosaic.version = 11 : i64} {
  func.func @_maxpool_kernel(%arg0: i32, %arg1: i32, %arg2: memref<2x2x9x1xf32, #tpu.memory_space<vmem>>, %arg3: memref<2x2x1xf32, #tpu.memory_space<vmem>>) attributes {dimension_semantics = [#tpu.dimension_semantics<parallel>, #tpu.dimension_semantics<parallel>], iteration_bounds = array<i64: 1, 1>, scalar_prefetch = 0 : i64, scratch_operands = 0 : i64, tpu.core_type = #tpu.core_type<tc>, window_params = [{transform_indices = @transform_0, window_bounds = array<i64: 2, 2, 9, 1>}, {transform_indices = @transform_1, window_bounds = array<i64: 2, 2, 1>}]} {
    %c0 = arith.constant 0 : index
    %c0_0 = arith.constant 0 : index
    %c0_1 = arith.constant 0 : index
    %c0_2 = arith.constant 0 : index
    %0 = vector.load %arg2[%c0, %c0_0, %c0_1, %c0_2] : memref<2x2x9x1xf32, #tpu.memory_space<vmem>>, vector<2x2x9x1xf32>
    %cst = arith.constant dense<0xFF800000> : vector<2x2x1xf32>
    %1 = vector.multi_reduction <maximumf>, %0, %cst [2] : vector<2x2x9x1xf32> to vector<2x2x1xf32>
    %c0_3 = arith.constant 0 : index
    %c0_4 = arith.constant 0 : index
    %c0_5 = arith.constant 0 : index
    %2 = vector.load %arg3[%c0_3, %c0_4, %c0_5] : memref<2x2x1xf32, #tpu.memory_space<vmem>>, vector<2x2x1xf32>
    tpu.vector_store %arg3[%c0_3, %c0_4, %c0_5], %1 {strides = array<i32>} : memref<2x2x1xf32, #tpu.memory_space<vmem>>, vector<2x2x1xf32>,
    return
  }
  func.func @transform_0(%arg0: i32, %arg1: i32) -> (i32, i32, i32, i32) {
    %c0_i32 = arith.constant 0 : i32
    %c0_i32_0 = arith.constant 0 : i32
    %c0_i32_1 = arith.constant 0 : i32
    return %arg1, %c0_i32, %c0_i32_0, %arg0 : i32, i32, i32, i32
  }
  func.func @transform_1(%arg0: i32, %arg1: i32) -> (i32, i32, i32) {
    %c0_i32 = arith.constant 0 : i32
    %c0_i32_0 = arith.constant 0 : i32
    return %arg1, %c0_i32, %arg0 : i32, i32, i32
  }
}

</mosaic_0001>

<bundles_post_ra>
// kernel: maxpool2d_ceil.1
= control target key start
LH: loop header
LB: loop body
LE: loop exit
PB: predicated region body
PF: predicated region fallthrough
CT: control target
= control target key end

     0   :  { %vm16_vm0 = vcmask 7168   ;;  %vm18_vm1 = vcmask 0   ;;  %vm58_vm2 = vcmask 1041409   ;;  %vm63_vm3 = vcmask 1024   ;;  %s118_s0 = inlined_call_operand.vmem [shape: f32[2,2,9,1], index: 0, kind: input, shape index: {}]   ;;  %s119_s1 = inlined_call_operand.vmem [shape: f32[2,2,1], index: 1, kind: output, shape index: {}]  }
   0x1   :  { %v8_v0 = vld [vmem:[%s118_s0] sm:$0xff]  ;;  %v9_v1 = vld [vmem:[%s118_s0 + $0x8] sm:$0x1]  ;;  %v10_v2 = vld [vmem:[%s118_s0 + $0x10] sm:$0xff] }
   0x2   :  { %v11_v3 = vld [vmem:[%s118_s0 + $0x18] sm:$0x1]  ;;  %v17_v4 = vsel %vm16_vm0, %v8_v0, -inf  ;;  %v19_v5 = vsel %vm18_vm1, %v9_v1, -inf  ;;  %v27_v6 = vsel %vm16_vm0, %v10_v2, -inf  ;;  %v12_v7 = vld [vmem:[%s118_s0 + $0x20] sm:$0xff] }
   0x3   :  { %v20_v8 = vmax.f32 %v17_v4, %v19_v5  ;;  %v28_v9 = vsel %vm18_vm1, %v11_v3, -inf  ;;  %v13_v10 = vld [vmem:[%s118_s0 + $0x28] sm:$0x1]  ;;  %v14_v11 = vld [vmem:[%s118_s0 + $0x30] sm:$0xff]  ;;  %v15_v12 = vld [vmem:[%s118_s0 + $0x38] sm:$0x1] }
   0x4   :  { %v29_v13 = vmax.f32 %v27_v6, %v28_v9  ;;  %v36_v14 = vsel %vm16_vm0, %v12_v7, -inf  ;;  %v37_v15 = vsel %vm18_vm1, %v13_v10, -inf  ;;  %v45_v16 = vsel %vm16_vm0, %v14_v11, -inf }
   0x5   :  { %v21_v17 = vrot.slane %v20_v8, 4  ;;  %v38_v18 = vmax.f32 %v36_v14, %v37_v15  ;;  %v46_v19 = vsel %vm18_vm1, %v15_v12, -inf }
   0x6   :  { %v30_v20 = vrot.slane %v29_v13, 4  ;;  %v47_v21 = vmax.f32 %v45_v16, %v46_v19 }
   0x7   :  { %v22_v22 = vmax.f32 %v20_v8, %v21_v17  ;;  %v39_v23 = vrot.slane %v38_v18, 4 }
   0x8   :  { %v31_v24 = vmax.f32 %v29_v13, %v30_v20  ;;  %v48_v25 = vrot.slane %v47_v21, 4 }
   0x9   :  { %v23_v26 = vrot.slane %v22_v22, 2  ;;  %v40_v27 = vmax.f32 %v38_v18, %v39_v23 }
   0xa   :  { %v32_v28 = vrot.slane %v31_v24, 2  ;;  %v49_v29 = vmax.f32 %v47_v21, %v48_v25 }
   0xb   :  { %v24_v30 = vmax.f32 %v22_v22, %v23_v26  ;;  %v41_v31 = vrot.slane %v40_v27, 2 }
   0xc   :  { %v33_v32 = vmax.f32 %v31_v24, %v32_v28  ;;  %v50_v33 = vrot.slane %v49_v29, 2 }
   0xd   :  { %v25_v34 = vrot.slane %v24_v30, 1  ;;  %v42_v35 = vmax.f32 %v40_v27, %v41_v31 }
   0xe   :  { %v34_v36 = vrot.slane %v33_v32, 1  ;;  %v51_v37 = vmax.f32 %v49_v29, %v50_v33 }
   0xf   :  { %v26_v38 = vmax.f32 %v24_v30, %v25_v34  ;;  %v43_v39 = vrot.slane %v42_v35, 1 }
  0x10   :  { %v35_v40 = vmax.f32 %v33_v32, %v34_v36  ;;  %v52_v41 = vrot.slane %v51_v37, 1 }
  0x11   :  { %v44_v42 = vmax.f32 %v42_v35, %v43_v39 }
  0x12   :  { %v59_v43 = vsel %vm58_vm2, %v35_v40, %v26_v38  ;;  %v53_v44 = vmax.f32 %v51_v37, %v52_v41 }
  0x13   :  { %64 = vst.msk [vmem:[%s119_s1] sm:$0x3] %vm63_vm3, %v59_v43 }
  0x14   :  { %v60_v45 = vsel %vm58_vm2, %v53_v44, %v44_v42 }
  0x15   :  { %65 = vst.msk [vmem:[%s119_s1 + $0x2] sm:$0x3] %vm63_vm3, %v60_v45 }

</bundles_post_ra>
